<compile_context>
chip_gen: v5e
topology: v5e:2x2
jax: 0.10.0
libtpu: 0.0.40
codegen_flags: <defaults>
</compile_context>

<pallas_src>
import math

import jax
import jax.numpy as jnp
from jax.experimental import pallas as pl
from jax.experimental.pallas import tpu as pltpu

_LANES = 128
_SOFTPLUS_THRESHOLD = 20.0          # matches PyTorch F.softplus default
_BLOCK_BYTES = 4 << 20              # ~4 MiB blocks: low per-step overhead on
                                    # v7x, safe on v5e/v6e with the limit below
_VMEM_LIMIT_BYTES = 32 << 20        # 2 bufs * (in + out) * 4 MiB = 16 MiB + slack
_SMALL_BLOCK_BYTES = 2 << 20        # single-block threshold for ragged tensors


def _mish_kernel(x_ref, o_ref):
    x = x_ref[...].astype(jnp.float32)
    # Mish(x) = x * tanh(softplus(x)).  With n = exp(x):
    #   tanh(log1p(n)) = ((1+n)^2 - 1) / ((1+n)^2 + 1) = d / (d + 2),  d = n*(n+2)
    # => one EUP exp instead of exp + log1p + tanh.
    n = jnp.exp(jnp.minimum(x, _SOFTPLUS_THRESHOLD))
    d = n * (n + 2.0)
    y = x * d * pl.reciprocal(d + 2.0, approx=False)
    # For x > 20, softplus(x) == x and tanh(x) == 1 in f32 => Mish(x) == x.
    o_ref[...] = jnp.where(x > _SOFTPLUS_THRESHOLD, x, y).astype(o_ref.dtype)


def _round_up(a, b):
    return -(-a // b) * b


def _pallas_mish_2d(x2d, row_tile, grid_rows, aliases, n_elems, itemsize):
    rows, cols = x2d.shape
    return pl.pallas_call(
        _mish_kernel,
        out_shape=jax.ShapeDtypeStruct((rows, cols), x2d.dtype),
        grid_spec=pltpu.PrefetchScalarGridSpec(
            num_scalar_prefetch=0,
            grid=(grid_rows,),
            in_specs=[pl.BlockSpec((row_tile, cols), lambda i: (i, 0))],
            out_specs=pl.BlockSpec((row_tile, cols), lambda i: (i, 0)),
        ),
        compiler_params=pltpu.CompilerParams(
            dimension_semantics=("parallel",),
            vmem_limit_bytes=_VMEM_LIMIT_BYTES,
        ),
        cost_estimate=pl.CostEstimate(
            flops=10 * n_elems,
            transcendentals=n_elems,
            bytes_accessed=2 * n_elems * itemsize,
        ),
        input_output_aliases=aliases,
    )(x2d)


def _mish_impl(x, block_bytes=_BLOCK_BYTES):
    orig_shape = x.shape
    dtype = x.dtype
    n = x.size
    if n == 0:
        return x

    itemsize = jnp.dtype(dtype).itemsize
    # Minimum sublane tile for the dtype (f32: 8, bf16/f16: 16, int8/fp8: 32).
    min_rows = {4: 8, 2: 16, 1: 32}.get(itemsize, 8)
    max_row_tile = max(
        min_rows, (block_bytes // (_LANES * itemsize)) // min_rows * min_rows
    )

    # --- Fast path: flat length divisible by 128 -> lane-dense slab, 0 copies.
    if n % _LANES == 0:
        rows = n // _LANES
        x2d = jnp.ravel(x).reshape(rows, _LANES)      # bitcast, no HBM copy
        if rows <= max_row_tile:
            row_tile, grid_rows = rows, 1             # block == full dims
        else:
            row_tile = max_row_tile                   # multiple of (8|16|32)
            grid_rows = pl.cdiv(rows, row_tile)       # partial last block OK
        out2d = _pallas_mish_2d(x2d, row_tile, grid_rows, {}, n, itemsize)
        return out2d.reshape(orig_shape)

    # --- Ragged flat length. Small tensors: one full-shape block, 0 copies.
    if x.ndim >= 2:
        rows2 = math.prod(orig_shape[:-1])
        cols2 = orig_shape[-1]
    else:
        rows2, cols2 = 1, n
    padded_bytes = (
        _round_up(rows2, min_rows) * _round_up(cols2, _LANES) * itemsize
    )
    if padded_bytes <= _SMALL_BLOCK_BYTES:
        x2d = jnp.ravel(x).reshape(rows2, cols2)      # bitcast, no HBM copy
        out2d = _pallas_mish_2d(x2d, rows2, 1, {}, n, itemsize)
        return out2d.reshape(orig_shape)

    # --- Large *and* ragged fallback (rare): pad the tail to a whole lane row.
    # TODO(synk): a manual-DMA 1D path could remove the remaining pad/slice
    # copies for large non-128-multiple sizes.
    rows = pl.cdiv(n, _LANES)
    n_pad = rows * _LANES
    x_flat = jnp.pad(jnp.ravel(x), (0, n_pad - n))
    x2d = x_flat.reshape(rows, _LANES)
    if rows <= max_row_tile:
        row_tile, grid_rows = rows, 1
    else:
        row_tile = max_row_tile
        grid_rows = pl.cdiv(rows, row_tile)
    # The padded temp is a dead intermediate -> safe to alias in place.
    out2d = _pallas_mish_2d(x2d, row_tile, grid_rows, {0: 0}, n_pad, itemsize)
    return out2d.reshape(-1)[:n].reshape(orig_shape)


mish = jax.jit(_mish_impl, static_argnames=("block_bytes",))


def _mish_ref(x):
    xf = x.astype(jnp.float32)
    sp = jnp.where(xf > 20.0, xf, jnp.log1p(jnp.exp(jnp.minimum(xf, 20.0))))
    return (xf * jnp.tanh(sp)).astype(x.dtype)


if __name__ == "__main__":
    key = jax.random.PRNGKey(0)

    # Main case: NCHW activation, flat length multiple of 128 (zero-copy path).
    x = jax.random.normal(key, (2, 4, 16, 16), dtype=jnp.float32) * 3.0
    y = jax.block_until_ready(mish(x))
    assert y.shape == x.shape and y.dtype == x.dtype
    assert jnp.allclose(y, _mish_ref(x), atol=1e-5, rtol=1e-5)

    # Ragged case: flat length 1155 (not a multiple of 128) -> small
    # full-shape-block path, no padding/slicing copies.
    x2 = jax.random.normal(jax.random.PRNGKey(1), (3, 5, 7, 11),
                           dtype=jnp.float32) * 3.0
    y2 = jax.block_until_ready(mish(x2))
    assert y2.shape == x2.shape and y2.dtype == x2.dtype
    assert jnp.allclose(y2, _mish_ref(x2), atol=1e-5, rtol=1e-5)

    # Multi-block path with a partial trailing block (forced tiny tile):
    # rows=20, row_tile=8 -> grid=3, last block masked by Pallas.
    x3 = jax.random.normal(jax.random.PRNGKey(2), (4, 5, 128),
                           dtype=jnp.float32) * 3.0
    y3 = jax.block_until_ready(mish(x3, block_bytes=8 * _LANES * 4))
    assert y3.shape == x3.shape and y3.dtype == x3.dtype
    assert jnp.allclose(y3, _mish_ref(x3), atol=1e-5, rtol=1e-5)

    # bf16 sanity check (kernel computes in f32, casts back).
    x4 = (jax.random.normal(jax.random.PRNGKey(3), (2, 4, 16, 16),
                            dtype=jnp.float32) * 3.0).astype(jnp.bfloat16)
    y4 = jax.block_until_ready(mish(x4))
    assert y4.shape == x4.shape and y4.dtype == x4.dtype
    assert jnp.allclose(y4.astype(jnp.float32),
                        _mish_ref(x4).astype(jnp.float32),
                        atol=2e-2, rtol=2e-2)

    print("KERNEL_OK")
</pallas_src>

<mosaic_0001>
module attributes {stable_mosaic.version = 11 : i64} {
  func.func @_mish_kernel(%arg0: i32, %arg1: memref<16x128xf32, #tpu.memory_space<vmem>>, %arg2: memref<16x128xf32, #tpu.memory_space<vmem>>) attributes {dimension_semantics = [#tpu.dimension_semantics<parallel>], iteration_bounds = array<i64: 1>, scalar_prefetch = 0 : i64, scratch_operands = 0 : i64, tpu.core_type = #tpu.core_type<tc>, window_params = [{transform_indices = @transform_0, window_bounds = array<i64: 16, 128>}, {transform_indices = @transform_1, window_bounds = array<i64: 16, 128>}]} {
    %c0 = arith.constant 0 : index
    %c0_0 = arith.constant 0 : index
    %0 = vector.load %arg1[%c0, %c0_0] : memref<16x128xf32, #tpu.memory_space<vmem>>, vector<16x128xf32>
    %cst = arith.constant 2.000000e+01 : f32
    %1 = vector.broadcast %cst : f32 to vector<16x128xf32>
    %2 = arith.minimumf %0, %1 : vector<16x128xf32>
    %3 = math.exp %2 : vector<16x128xf32>
    %cst_1 = arith.constant 2.000000e+00 : f32
    %4 = vector.broadcast %cst_1 : f32 to vector<16x128xf32>
    %5 = arith.addf %3, %4 : vector<16x128xf32>
    %6 = arith.mulf %3, %5 : vector<16x128xf32>
    %7 = arith.mulf %0, %6 : vector<16x128xf32>
    %cst_2 = arith.constant 2.000000e+00 : f32
    %8 = vector.broadcast %cst_2 : f32 to vector<16x128xf32>
    %9 = arith.addf %6, %8 : vector<16x128xf32>
    %10 = tpu.reciprocal %9 : vector<16x128xf32> -> vector<16x128xf32>
    %11 = arith.mulf %7, %10 : vector<16x128xf32>
    %cst_3 = arith.constant 2.000000e+01 : f32
    %12 = vector.broadcast %cst_3 : f32 to vector<16x128xf32>
    %13 = arith.cmpf ogt, %0, %12 : vector<16x128xf32>
    %14 = arith.select %13, %0, %11 : vector<16x128xi1>, vector<16x128xf32>
    %c0_4 = arith.constant 0 : index
    %c0_5 = arith.constant 0 : index
    %15 = vector.load %arg2[%c0_4, %c0_5] : memref<16x128xf32, #tpu.memory_space<vmem>>, vector<16x128xf32>
    tpu.vector_store %arg2[%c0_4, %c0_5], %14 {strides = array<i32>} : memref<16x128xf32, #tpu.memory_space<vmem>>, vector<16x128xf32>,
    return
  }
  func.func @transform_0(%arg0: i32) -> (i32, i32) {
    %c0_i32 = arith.constant 0 : i32
    %c0_i32_0 = arith.constant 0 : i32
    return %arg0, %c0_i32 : i32, i32
  }
  func.func @transform_1(%arg0: i32) -> (i32, i32) {
    %c0_i32 = arith.constant 0 : i32
    %c0_i32_0 = arith.constant 0 : i32
    return %arg0, %c0_i32 : i32, i32
  }
}

</mosaic_0001>

<bundles_post_ra>
// kernel: _mish_impl.1
= control target key start
LH: loop header
LB: loop body
LE: loop exit
PB: predicated region body
PF: predicated region fallthrough
CT: control target
= control target key end

     0   :  { %s94_s0 = inlined_call_operand.vmem [shape: f32[16,128], index: 0, kind: input, shape index: {}]   ;;  %s95_s1 = inlined_call_operand.vmem [shape: f32[16,128], index: 1, kind: output, shape index: {}]  }
   0x1   :  { %v8_v0 = vld [vmem:[%s94_s0] sm:$0xff]  ;;  %v9_v1 = vld [vmem:[%s94_s0 + $0x8] sm:$0xff] }
   0x2   :  { %v10_v2 = vmin.f32 %v8_v0, 20.0  ;;  %v11_v3 = vmin.f32 %v9_v1, 20.0  ;;  %vm54_vm8 = vcmp.gt.f32.partialorder %v8_v0, 20.0  ;;  %vm55_vm9 = vcmp.gt.f32.partialorder %v9_v1, 20.0 }
   0x4   :  { %v12_v4 = vmul.f32 1.442695, %v10_v2  ;;  %v14_v5 = vmul.f32 1.442695, %v11_v3 }
   0x6   :  { %64 = vpow2.f32 %v12_v4 }
   0x7   :  { %66 = vpow2.f32 %v14_v5 }
   0xc   :  { %v65_v6 = vpop.eup %64 }
   0xd   :  { %v67_v7 = vpop.eup %66  ;;  %v16_v8 = vadd.f32 2.0, %v65_v6 }
   0xe   :  { %v17_v9 = vadd.f32 2.0, %v67_v7 }
   0xf   :  { %v18_v10 = vmul.f32 %v65_v6, %v16_v8 }
  0x10   :  { %v19_v11 = vmul.f32 %v67_v7, %v17_v9 }
  0x11   :  { %v22_v12 = vadd.f32 2.0, %v18_v10  ;;  %v20_v27 = vmul.f32 %v18_v10, %v8_v0 }
  0x12   :  { %v23_v13 = vadd.f32 2.0, %v19_v11  ;;  %v21_v30 = vmul.f32 %v19_v11, %v9_v1 }
  0x13   :  { %68 = vrcp.f32 %v22_v12  ;;  %vm29_vm0 = vweird.f32 %v22_v12  ;;  %v35_v17 = vand.u32 2147483648, %v22_v12  ;;  %v33_v20 = vand.u32 2147483647, %v22_v12 }
  0x14   :  { %70 = vrcp.f32 %v23_v13  ;;  %v49_v21 = vand.u32 2147483648, %v23_v13  ;;  %vm43_vm2 = vweird.f32 %v23_v13  ;;  %v47_v23 = vand.u32 2147483647, %v23_v13 }
  0x15   :  { %v36_v25 = vor.u32 1.1754944e-38, %v35_v17  ;;  %vm34_vm5 = vcmp.eq.f32.partialorder %v33_v20, 8.507059e+37 }
  0x16   :  { %v50_v29 = vor.u32 1.1754944e-38, %v49_v21  ;;  %vm48_vm7 = vcmp.eq.f32.partialorder %v47_v23, 8.507059e+37 }
  0x19   :  { %v69_v14 = vpop.eup %68 }
  0x1a   :  { %v71_v15 = vpop.eup %70  ;;  %v25_v16 = vmul.f32 %v69_v14, %v22_v12  ;;  %vm30_vm1 = vweird.f32 %v69_v14 }
  0x1b   :  { %v39_v18 = vmul.f32 %v71_v15, %v23_v13  ;;  %vm44_vm3 = vweird.f32 %v71_v15  ;;  %vm31_vm4 = vmor %vm29_vm0, %vm30_vm1 }
  0x1c   :  { %v26_v19 = vsub.f32 1.0, %v25_v16  ;;  %vm45_vm6 = vmor %vm43_vm2, %vm44_vm3 }
  0x1d   :  { %v40_v22 = vsub.f32 1.0, %v39_v18 }
  0x1e   :  { %v27_v24 = vmul.f32 %v69_v14, %v26_v19 }
  0x1f   :  { %v41_v26 = vmul.f32 %v71_v15, %v40_v22 }
  0x20   :  { %v28_v28 = vadd.f32 %v69_v14, %v27_v24 }
  0x21   :  { %v42_v31 = vadd.f32 %v71_v15, %v41_v26 }
  0x22   :  { %v32_v32 = vsel %vm31_vm4, %v69_v14, %v28_v28 }
  0x23   :  { %v37_v33 = vsel %vm34_vm5, %v36_v25, %v32_v32  ;;  %v46_v34 = vsel %vm45_vm6, %v71_v15, %v42_v31 }
  0x24   :  { %v52_v35 = vmul.f32 %v37_v33, %v20_v27  ;;  %v51_v36 = vsel %vm48_vm7, %v50_v29, %v46_v34 }
  0x25   :  { %v53_v37 = vmul.f32 %v51_v36, %v21_v30 }
  0x26   :  { %v56_v38 = vsel %vm54_vm8, %v8_v0, %v52_v35 }
  0x27   :  { %58 = vst [vmem:[%s95_s1] sm:$0xff] %v56_v38  ;;  %v57_v39 = vsel %vm55_vm9, %v9_v1, %v53_v37 }
  0x28   :  { %59 = vst [vmem:[%s95_s1 + $0x8] sm:$0xff] %v57_v39 }

</bundles_post_ra>
